<compile_context>
chip_gen: v7x
topology: tpu7x:2x2x1
jax: 0.10.0
libtpu: 0.0.40
codegen_flags: <defaults>
</compile_context>

<pallas_src>
import functools
import math

import numpy as np
import jax
import jax.numpy as jnp
from jax.experimental import pallas as pl
from jax.experimental.pallas import tpu as pltpu

ACT_DTYPE = jnp.bfloat16          # non-adapter params / activations ("half" in PyTorch)
LN_EPS = 1e-5
BLOCK_ROWS = 512                  # row tile for simple row-wise matmul kernels
MLP_BLOCK_ROWS = 256              # smaller tile so the fused MLP fits v7x's 64 MiB VMEM


# ------------------------ capability probe / spec helpers ------------------------

_BUFFERED1_OK = None


def _buffered1_supported():
    """Probe once whether single-buffered (pipeline_mode=pl.Buffered(1)) blocks lower
    and run correctly on this backend; otherwise fall back to default buffering."""
    global _BUFFERED1_OK
    if _BUFFERED1_OK is None:
        try:
            spec = pl.BlockSpec((8, 128), lambda i: (0, 0), pipeline_mode=pl.Buffered(1))

            def _probe_kernel(x_ref, o_ref):
                o_ref[...] = x_ref[...] + 1.0

            f = pl.pallas_call(
                _probe_kernel,
                out_shape=jax.ShapeDtypeStruct((16, 128), jnp.float32),
                grid=(2,),
                in_specs=[spec],
                out_specs=pl.BlockSpec((8, 128), lambda i: (i, 0)),
            )
            y = jax.block_until_ready(f(jnp.ones((8, 128), jnp.float32)))
            _BUFFERED1_OK = bool(jnp.all(y == 2.0))
        except Exception:
            _BUFFERED1_OK = False
    return _BUFFERED1_OK


def _w_spec(shape):
    """BlockSpec for a grid-invariant (weight) operand: constant index map,
    single-buffered when supported (the block never changes across grid steps)."""
    nd = len(shape)
    index_map = lambda *_: (0,) * nd
    if _buffered1_supported():
        return pl.BlockSpec(shape, index_map, pipeline_mode=pl.Buffered(1))
    return pl.BlockSpec(shape, index_map)


def _n_weight_bufs():
    return 1 if _buffered1_supported() else 2


def _vmem_limit(entries):
    """Scoped-VMEM budget from actual tile sizes (2x headroom); never below 32 MiB
    so we only ever *raise* the backend default."""
    total = 0
    for shape, dtype, nbuf in entries:
        total += int(np.prod(shape)) * jnp.dtype(dtype).itemsize * nbuf
    return int(min(100 << 20, max(32 << 20, 2 * total)))


def _cparams(entries):
    return pltpu.CompilerParams(dimension_semantics=("parallel",),
                                vmem_limit_bytes=_vmem_limit(entries))


# ----------------------------- generic dense kernel ------------------------------

def _dense_kernel(*refs, ln, has_bias, eps):
    refs = list(refs)
    o_ref = refs.pop()
    i = 0
    x_ref = refs[i]; i += 1
    if ln:
        g_ref, bta_ref = refs[i], refs[i + 1]; i += 2
    w_ref = refs[i]; i += 1
    bias_ref = refs[i] if has_bias else None

    x = x_ref[...].astype(jnp.float32)
    if ln:                                   # LayerNorm fused into the consuming matmul
        mean = jnp.mean(x, axis=-1, keepdims=True)
        cen = x - mean
        var = jnp.mean(cen * cen, axis=-1, keepdims=True)
        x = cen * jax.lax.rsqrt(var + eps)
        x = x * g_ref[...].astype(jnp.float32) + bta_ref[...].astype(jnp.float32)

    w = w_ref[...]
    acc = jnp.dot(x.astype(w.dtype), w, preferred_element_type=jnp.float32)
    if has_bias:
        acc = acc + bias_ref[...].astype(jnp.float32)
    o_ref[...] = acc.astype(o_ref.dtype)


def dense(x, w, *, bias=None, ln_params=None, out_dtype=None, block_rows=BLOCK_ROWS):
    """out = LN?(x) @ w [+ bias], row-tiled over M."""
    M, K = x.shape
    N = w.shape[1]
    out_dtype = out_dtype or x.dtype
    TM = M if M <= block_rows else block_rows
    nw = _n_weight_bufs()

    inputs = [x]
    in_specs = [pl.BlockSpec((TM, K), lambda i: (i, 0))]
    if ln_params is not None:
        g, b = ln_params
        inputs += [g.reshape(1, K), b.reshape(1, K)]
        in_specs += [_w_spec((1, K)), _w_spec((1, K))]
    inputs.append(w)
    in_specs.append(_w_spec((K, N)))
    if bias is not None:
        inputs.append(bias.reshape(1, N))
        in_specs.append(_w_spec((1, N)))

    entries = [((TM, K), x.dtype, 2), ((TM, N), out_dtype, 2),
               ((K, N), w.dtype, nw), ((TM, max(K, N)), jnp.float32, 2)]
    kernel = functools.partial(_dense_kernel, ln=ln_params is not None,
                               has_bias=bias is not None, eps=LN_EPS)
    return pl.pallas_call(
        kernel,
        out_shape=jax.ShapeDtypeStruct((M, N), out_dtype),
        grid=(pl.cdiv(M, TM),),
        in_specs=in_specs,
        out_specs=pl.BlockSpec((TM, N), lambda i: (i, 0)),
        compiler_params=_cparams(entries),
    )(*inputs)


# ----------------------------- standalone LayerNorm ------------------------------
# Only used when layer 0 has a pre-attention adapter (otherwise ln_pre is fused).

def _layernorm_kernel(x_ref, g_ref, b_ref, o_ref, *, eps):
    x = x_ref[...].astype(jnp.float32)       # LayerNorm subclass: compute in fp32
    mean = jnp.mean(x, axis=-1, keepdims=True)
    cen = x - mean
    var = jnp.mean(cen * cen, axis=-1, keepdims=True)
    y = cen * jax.lax.rsqrt(var + eps)
    y = y * g_ref[...].astype(jnp.float32) + b_ref[...].astype(jnp.float32)
    o_ref[...] = y.astype(o_ref.dtype)


def layer_norm(x, gamma, beta, eps=LN_EPS, block_rows=BLOCK_ROWS):
    orig_shape = x.shape
    C = orig_shape[-1]
    x2 = x.reshape(-1, C)
    M = x2.shape[0]
    TM = M if M <= block_rows else block_rows
    out = pl.pallas_call(
        functools.partial(_layernorm_kernel, eps=eps),
        out_shape=jax.ShapeDtypeStruct((M, C), x.dtype),
        grid=(pl.cdiv(M, TM),),
        in_specs=[pl.BlockSpec((TM, C), lambda i: (i, 0)),
                  _w_spec((1, C)), _w_spec((1, C))],
        out_specs=pl.BlockSpec((TM, C), lambda i: (i, 0)),
        compiler_params=_cparams([((TM, C), x.dtype, 4), ((TM, C), jnp.float32, 2)]),
    )(x2, gamma.reshape(1, C), beta.reshape(1, C))
    return out.reshape(orig_shape)


# ---------------------- fused attention residual block ---------------------------
# one grid step per sequence: out = [ln_pre?] x + out_proj( SDPA( in_proj( ln1(x) ) ) )

def _attn_block_kernel(*refs, heads, dh, scale, eps, pre_ln):
    refs = list(refs)
    ao_ref = refs.pop()        # (L, C)  bf16 scratch: per-head outputs (column concat)
    qkv_ref = refs.pop()       # (L, 3C) bf16 scratch
    o_ref = refs.pop()
    i = 0
    x_ref = refs[i]; i += 1
    if pre_ln:
        pg_ref, pb_ref = refs[i], refs[i + 1]; i += 2
    g_ref, b_ref = refs[i], refs[i + 1]; i += 2
    wi_ref, bi_ref = refs[i], refs[i + 1]; i += 2
    wo_ref, bo_ref = refs[i], refs[i + 1]; i += 2

    C = heads * dh
    x = x_ref[...].astype(jnp.float32)                        # (L, C)
    if pre_ln:                                                # fused ln_pre (layer 0 only)
        mean = jnp.mean(x, axis=-1, keepdims=True)
        cen = x - mean
        var = jnp.mean(cen * cen, axis=-1, keepdims=True)
        x = cen * jax.lax.rsqrt(var + eps)
        x = x * pg_ref[...].astype(jnp.float32) + pb_ref[...].astype(jnp.float32)
        x = x.astype(ACT_DTYPE).astype(jnp.float32)           # match PyTorch half round-trip
    xr = x                                                    # residual base

    mean = jnp.mean(xr, axis=-1, keepdims=True)
    cen = xr - mean
    var = jnp.mean(cen * cen, axis=-1, keepdims=True)
    xn = cen * jax.lax.rsqrt(var + eps)
    xn = xn * g_ref[...].astype(jnp.float32) + b_ref[...].astype(jnp.float32)

    wi = wi_ref[...]
    qkv = jnp.dot(xn.astype(wi.dtype), wi, preferred_element_type=jnp.float32)
    qkv = qkv + bi_ref[...].astype(jnp.float32)               # (L, 3C), layout [q|k|v]
    qkv_ref[...] = qkv.astype(jnp.bfloat16)                   # bound the f32 live range

    # Head loop with static lane slices into the bf16 scratch; per-head outputs are
    # written into ao_ref so no large f32 accumulator stays live across heads.
    # (A Python loop keeps the q/k/v lane offsets static; state lives in refs.)
    for h in range(heads):
        q = qkv_ref[:, h * dh:(h + 1) * dh] * scale           # scale folded into q (L, dh)
        k = qkv_ref[:, C + h * dh:C + (h + 1) * dh]
        v = qkv_ref[:, 2 * C + h * dh:2 * C + (h + 1) * dh]
        s = jax.lax.dot_general(q, k, (((1,), (1,)), ((), ())),
                                preferred_element_type=jnp.float32)   # (L, L)
        m = jnp.max(s, axis=-1, keepdims=True)
        p = jnp.exp(s - m)
        l = jnp.sum(p, axis=-1, keepdims=True)
        o = jnp.dot(p.astype(jnp.bfloat16), v, preferred_element_type=jnp.float32)
        o = o / l                                              # exact softmax normalization
        ao_ref[:, h * dh:(h + 1) * dh] = o.astype(jnp.bfloat16)

    # single full-depth out_proj (K = C) + bias + residual
    wo = wo_ref[...]
    y = jnp.dot(ao_ref[...], wo, preferred_element_type=jnp.float32)
    y = y + bo_ref[...].astype(jnp.float32)
    o_ref[...] = (xr + y).astype(o_ref.dtype)


def attention_block_fused(x, lp, heads, pre_ln=None):
    BT, L, C = x.shape
    dh = C // heads
    assert dh * heads == C
    nw = _n_weight_bufs()

    inputs = [x]
    in_specs = [pl.BlockSpec((None, L, C), lambda b: (b, 0, 0))]
    if pre_ln is not None:
        pg, pb = pre_ln
        inputs += [pg.reshape(1, C), pb.reshape(1, C)]
        in_specs += [_w_spec((1, C)), _w_spec((1, C))]
    inputs += [lp["ln1_g"].reshape(1, C), lp["ln1_b"].reshape(1, C),
               lp["in_proj_w"], lp["in_proj_b"].reshape(1, 3 * C),
               lp["out_proj_w"], lp["out_proj_b"].reshape(1, C)]
    in_specs += [_w_spec((1, C)), _w_spec((1, C)),
                 _w_spec((C, 3 * C)), _w_spec((1, 3 * C)),
                 _w_spec((C, C)), _w_spec((1, C))]

    entries = [((L, C), x.dtype, 4),
               ((C, 3 * C), lp["in_proj_w"].dtype, nw),
               ((C, C), lp["out_proj_w"].dtype, nw),
               ((L, 3 * C), jnp.bfloat16, 1), ((L, C), jnp.bfloat16, 1),
               ((L, 3 * C), jnp.float32, 1), ((L, L), jnp.float32, 2),
               ((L, C), jnp.float32, 2)]
    kernel = functools.partial(_attn_block_kernel, heads=heads, dh=dh,
                               scale=1.0 / math.sqrt(dh), eps=LN_EPS,
                               pre_ln=pre_ln is not None)
    return pl.pallas_call(
        kernel,
        out_shape=jax.ShapeDtypeStruct((BT, L, C), x.dtype),
        grid=(BT,),
        in_specs=in_specs,
        out_specs=pl.BlockSpec((None, L, C), lambda b: (b, 0, 0)),
        scratch_shapes=[pltpu.VMEM((L, 3 * C), jnp.bfloat16),
                        pltpu.VMEM((L, C), jnp.bfloat16)],
        compiler_params=_cparams(entries),
    )(*inputs)


# --------------------------- fused MLP residual block ----------------------------
# row-tiled: out = x + c_proj( quick_gelu( c_fc( ln2(x) ) ) )

def _mlp_block_kernel(x_ref, g_ref, b_ref, w1_ref, b1_ref, w2_ref, b2_ref, o_ref, *, eps):
    xr = x_ref[...].astype(jnp.float32)
    mean = jnp.mean(xr, axis=-1, keepdims=True)
    cen = xr - mean
    var = jnp.mean(cen * cen, axis=-1, keepdims=True)
    xn = cen * jax.lax.rsqrt(var + eps)
    xn = xn * g_ref[...].astype(jnp.float32) + b_ref[...].astype(jnp.float32)

    w1 = w1_ref[...]
    h = jnp.dot(xn.astype(w1.dtype), w1, preferred_element_type=jnp.float32)
    h = h + b1_ref[...].astype(jnp.float32)
    w2 = w2_ref[...]
    h = (h * jax.nn.sigmoid(1.702 * h)).astype(w2.dtype)      # QuickGELU -> bf16 immediately
    y = jnp.dot(h, w2, preferred_element_type=jnp.float32)
    y = y + b2_ref[...].astype(jnp.float32)
    o_ref[...] = (xr + y).astype(o_ref.dtype)


def mlp_block_fused(x, lp, block_rows=MLP_BLOCK_ROWS):
    BT, L, C = x.shape
    C4 = lp["c_fc_w"].shape[1]
    x2 = x.reshape(BT * L, C)
    M = x2.shape[0]
    TM = M if M <= block_rows else block_rows
    nw = _n_weight_bufs()
    entries = [((TM, C), x.dtype, 4),
               ((C, C4), lp["c_fc_w"].dtype, nw), ((C4, C), lp["c_proj_w"].dtype, nw),
               ((TM, C4), jnp.float32, 1), ((TM, C4), jnp.bfloat16, 1),
               ((TM, C), jnp.float32, 2)]
    out = pl.pallas_call(
        functools.partial(_mlp_block_kernel, eps=LN_EPS),
        out_shape=jax.ShapeDtypeStruct((M, C), x.dtype),
        grid=(pl.cdiv(M, TM),),
        in_specs=[pl.BlockSpec((TM, C), lambda i: (i, 0)),
                  _w_spec((1, C)), _w_spec((1, C)),
                  _w_spec((C, C4)), _w_spec((1, C4)),
                  _w_spec((C4, C)), _w_spec((1, C))],
        out_specs=pl.BlockSpec((TM, C), lambda i: (i, 0)),
        compiler_params=_cparams(entries),
    )(x2, lp["ln2_g"].reshape(1, C), lp["ln2_b"].reshape(1, C),
      lp["c_fc_w"], lp["c_fc_b"].reshape(1, C4),
      lp["c_proj_w"], lp["c_proj_b"].reshape(1, C))
    return out.reshape(BT, L, C)


# ------------------------- fused ST-Adapter block --------------------------------
# one grid step per temporal group: fc1 -> depthwise Conv3d -> fc2 (+residual on
# tokens 1:), CLS row copied through.  The Ca-wide bottleneck never leaves VMEM and
# lives in the lane-dense (H, W*Ca) layout ((W+2)*Ca == 128 at this config).

def _adapter_block_kernel(x_ref, w1_ref, b1_ref, cw_ref, cb_ref, w2_ref, b2_ref,
                          o_ref, pad_ref, *, T, L, H, W, Ca, kt, kh, kw):
    pt, ph, pw = kt // 2, kh // 2, kw // 2
    WC = W * Ca
    pad_ref[...] = jnp.zeros_like(pad_ref)                    # zero halo (+ interior)

    w1 = w1_ref[...]                                          # (C, Ca)  f32 (adapter stays fp32)
    b1 = b1_ref[...].astype(jnp.float32)                      # (1, Ca)
    # fc1 per tube, scattered into the halo-padded lane-dense conv buffer
    for t in range(T):
        body = x_ref[t, pl.ds(1, L - 1), :]                   # (H*W, C) bf16
        y = jnp.dot(body.astype(w1.dtype), w1, preferred_element_type=jnp.float32)
        y = y + b1                                            # (H*W, Ca)
        pad_ref[pt + t, pl.ds(ph, H), pl.ds(pw * Ca, WC)] = y.reshape(H, WC)

    cw = cw_ref[...].astype(jnp.float32)                      # (kt*kh*kw, WC) channel-tiled
    cb = cb_ref[...].astype(jnp.float32)                      # (1, WC)
    w2 = w2_ref[...]                                          # (Ca, C)
    b2 = b2_ref[...].astype(jnp.float32)                      # (1, C)
    for t in range(T):
        acc = jnp.zeros((H, WC), jnp.float32)
        tap = 0
        for dt in range(kt):
            for dy in range(kh):
                for dx in range(kw):
                    patch = pad_ref[t + dt, pl.ds(dy, H), pl.ds(dx * Ca, WC)]
                    acc = acc + patch * cw[tap:tap + 1, :]
                    tap += 1
        acc = acc + cb                                        # depthwise conv done (H, WC)
        z = jnp.dot(acc.reshape(H * W, Ca).astype(w2.dtype), w2,
                    preferred_element_type=jnp.float32)
        z = z + b2                                            # (H*W, C)
        o_ref[t, 0:1, :] = x_ref[t, 0:1, :]                   # CLS row untouched
        body_in = x_ref[t, pl.ds(1, L - 1), :].astype(jnp.float32)
        o_ref[t, pl.ds(1, L - 1), :] = (body_in + z).astype(o_ref.dtype)


def adapter_block_fused(x, ap, T, ksize):
    BT, L, C = x.shape
    B = BT // T                      # matches PyTorch: tube axis plays the temporal role
    assert B * T == BT
    Ca = ap["fc1_w"].shape[1]
    H = W = int(round(math.sqrt(L - 1)))
    assert L - 1 == H * W
    kt, kh, kw = ksize
    pt, ph, pw = kt // 2, kh // 2, kw // 2
    WC = W * Ca
    nw = _n_weight_bufs()

    x4 = x.reshape(B, T, L, C)
    # channel-tile the depthwise weights/bias onto the lane-dense (W*Ca) layout
    cw = jnp.tile(ap["conv_w"].reshape(kt, kh, kw, 1, Ca),
                  (1, 1, 1, W, 1)).reshape(kt * kh * kw, WC)
    cb = jnp.tile(ap["conv_b"].reshape(1, 1, Ca), (1, W, 1)).reshape(1, WC)

    pad_shape = (T + 2 * pt, H + 2 * ph, (W + 2 * pw) * Ca)
    entries = [((T, L, C), x.dtype, 4),
               ((C, Ca), ap["fc1_w"].dtype, nw), ((Ca, C), ap["fc2_w"].dtype, nw),
               ((kt * kh * kw, WC), jnp.float32, nw),
               (pad_shape, jnp.float32, 1), ((L, C), jnp.float32, 4)]
    kernel = functools.partial(_adapter_block_kernel, T=T, L=L, H=H, W=W, Ca=Ca,
                               kt=kt, kh=kh, kw=kw)
    out = pl.pallas_call(
        kernel,
        out_shape=jax.ShapeDtypeStruct((B, T, L, C), x.dtype),
        grid=(B,),
        in_specs=[pl.BlockSpec((None, T, L, C), lambda b: (b, 0, 0, 0)),
                  _w_spec((C, Ca)), _w_spec((1, Ca)),
                  _w_spec((kt * kh * kw, WC)), _w_spec((1, WC)),
                  _w_spec((Ca, C)), _w_spec((1, C))],
        out_specs=pl.BlockSpec((None, T, L, C), lambda b: (b, 0, 0, 0)),
        scratch_shapes=[pltpu.VMEM(pad_shape, jnp.float32)],
        compiler_params=_cparams(entries),
    )(x4, ap["fc1_w"], ap["fc1_b"].reshape(1, Ca), cw, cb,
      ap["fc2_w"], ap["fc2_b"].reshape(1, C))
    return out.reshape(BT, L, C)


# --------------------------- expand_tubevit glue ---------------------------

SPATIAL_START = [45, 48, 87, 90]
PATCH_SIZES = [3, 5, 7, 9]
S_TUBE = 196  # tokens per tube (fixed by expand_tubevit's hard-coded 14x14 grid)


def _get_patch_index(spatial_point, patch_size):
    if patch_size == 3:
        sp = spatial_point
    elif patch_size == 5:
        sp = spatial_point - 15
    elif patch_size == 7:
        sp = spatial_point - 30
    elif patch_size == 9:
        sp = spatial_point - 45
    gap = (patch_size + 1) // 2
    additional = [sp, sp + gap, sp + 2 * gap,
                  sp + 14 * gap, sp + 14 * gap + 2 * gap,
                  sp + 28 * gap, sp + 28 * gap + gap, sp + 28 * gap + 2 * gap]
    center = [14 * i + sp + j + 1 for j in range(patch_size) for i in range(patch_size)]
    return sorted(additional + center)


def build_tube_indices(T):
    """Static (frame, patch) gather indices of expand_tubevit (14x14 grid)."""
    frame_idx, patch_idx = [], []
    for f0 in range(0, T, 4):
        for sp in SPATIAL_START:
            fi, pi = [], []
            for i, f in enumerate(range(f0, f0 + 4)):
                sel = _get_patch_index(sp, PATCH_SIZES[i])
                fi += [f] * len(sel)
                pi += sel
            frame_idx.append(fi)
            patch_idx.append(pi)
    return np.asarray(frame_idx, np.int32), np.asarray(patch_idx, np.int32)


# ------------------------------ full forward -------------------------------

def expand_st_adapter_forward(x, params, cfg):
    # x: (B, 3, T, R, R)
    B, _, T, R, _ = x.shape
    assert T == 8, "temporal positional embedding is (8, S*C); requires T == 8"
    p, C = cfg["patch_size"], cfg["width"]
    Hp = R // p
    S = Hp * Hp

    x = x.astype(ACT_DTYPE)
    # (B,3,T,R,R) -> (BT,3,R,R); conv1 (stride == kernel, no bias) as patches @ W
    xt = jnp.transpose(x, (0, 2, 1, 3, 4)).reshape(B * T, 3, R, R)
    patches = xt.reshape(B * T, 3, Hp, p, Hp, p)
    patches = jnp.transpose(patches, (0, 2, 4, 1, 3, 5)).reshape(B * T * S, 3 * p * p)
    tok = dense(patches, params["conv1_w"], out_dtype=ACT_DTYPE)          # no bias
    tok = tok.reshape(B * T, S, C)
    tok = tok + params["spatial_pos"][None].astype(ACT_DTYPE)
    tok = tok.reshape(B, T, S * C) + params["temporal_pos"][None].astype(ACT_DTYPE)
    tok = tok.reshape(B, T, S, C)

    # expand_tubevit: static spatio-temporal patch gather -> (B, n_tubes, 196, C)
    fi, pi = cfg["tube_frame_idx"], cfg["tube_patch_idx"]
    tubes = tok[:, fi, pi, :]
    n_tubes = tubes.shape[1]
    xseq = tubes.reshape(B * n_tubes, S_TUBE, C)

    cls = jnp.broadcast_to(params["class_embedding"].astype(ACT_DTYPE).reshape(1, 1, C),
                           (B * n_tubes, 1, C))
    xseq = jnp.concatenate([cls, xseq], axis=1)                           # (B*n_tubes, 197, C)

    layers = params["layers"]
    # fold ln_pre into layer 0's attention block unless an adapter runs before it
    fuse_pre_ln = len(layers) > 0 and layers[0]["ada_attn"] is None
    if not fuse_pre_ln:
        xseq = layer_norm(xseq, params["ln_pre_g"], params["ln_pre_b"])

    for li, lp in enumerate(layers):
        if lp["ada_attn"] is not None:
            xseq = adapter_block_fused(xseq, lp["ada_attn"], T, cfg["adapter_kernel_size"])
        pre_ln = ((params["ln_pre_g"], params["ln_pre_b"])
                  if (fuse_pre_ln and li == 0) else None)
        xseq = attention_block_fused(xseq, lp, cfg["heads"], pre_ln=pre_ln)
        if lp["ada_mlp"] is not None:
            xseq = adapter_block_fused(xseq, lp["ada_mlp"], T, cfg["adapter_kernel_size"])
        xseq = mlp_block_fused(xseq, lp)

    xout = xseq.reshape(B, n_tubes, S_TUBE + 1, C)
    # classifier == 'mean': CLS token mean over tubes -> (LN -> fc fused); dropout = identity
    pooled = jnp.mean(xout[:, :, 0, :].astype(jnp.float32), axis=1)       # (B, C)
    logits = dense(pooled, params["expand_fc_w"], bias=params["expand_fc_b"],
                   ln_params=(params["ln_post_g"], params["ln_post_b"]),
                   out_dtype=jnp.float32)
    return logits


# ------------------------------- parameters --------------------------------

def init_params(key, cfg):
    R, p, C = cfg["input_resolution"], cfg["patch_size"], cfg["width"]
    S = (R // p) ** 2
    Ca = cfg["adapter_width"]
    nlayers = cfg["layers"]
    scale = C ** (-0.5)
    keys = iter(jax.random.split(key, 64))

    def nrm(shape, std, dtype=ACT_DTYPE):
        return (jax.random.normal(next(keys), shape, jnp.float32) * std).astype(dtype)

    kt, kh, kw = cfg["adapter_kernel_size"]

    def make_adapter():
        # adapter params stay float32 (PyTorch only .half()'s non-adapter params)
        return {
            "fc1_w": nrm((C, Ca), 1.0 / math.sqrt(C), jnp.float32),
            "fc1_b": jnp.zeros((Ca,), jnp.float32),                  # constant_(0)
            "conv_w": jnp.zeros((kt, kh, kw, Ca), jnp.float32),      # constant_(0)
            "conv_b": jnp.zeros((Ca,), jnp.float32),                 # constant_(0)
            "fc2_w": nrm((Ca, C), 1.0 / math.sqrt(Ca), jnp.float32),
            "fc2_b": jnp.zeros((C,), jnp.float32),                   # constant_(0)
        }

    params = {
        "conv1_w": nrm((3 * p * p, C), 1.0 / math.sqrt(3 * p * p)),
        "class_embedding": nrm((C,), scale),
        "spatial_pos": nrm((S, C), scale),
        "temporal_pos": nrm((8, S * C), scale),
        "ln_pre_g": jnp.ones((C,), ACT_DTYPE),
        "ln_pre_b": jnp.zeros((C,), ACT_DTYPE),
        "ln_post_g": jnp.ones((C,), ACT_DTYPE),
        "ln_post_b": jnp.zeros((C,), ACT_DTYPE),
        "expand_fc_w": nrm((C, cfg["num_classes"]), 0.02),
        "expand_fc_b": jnp.zeros((cfg["num_classes"],), ACT_DTYPE),
        "layers": [],
    }

    for i in range(nlayers):
        use_adapter = i >= nlayers - cfg["adapter_layers"]
        lp = {
            "in_proj_w": nrm((C, 3 * C), 1.0 / math.sqrt(C)),
            "in_proj_b": jnp.zeros((3 * C,), ACT_DTYPE),
            "out_proj_w": nrm((C, C), 1.0 / math.sqrt(C)),
            "out_proj_b": jnp.zeros((C,), ACT_DTYPE),
            "ln1_g": jnp.ones((C,), ACT_DTYPE), "ln1_b": jnp.zeros((C,), ACT_DTYPE),
            "ln2_g": jnp.ones((C,), ACT_DTYPE), "ln2_b": jnp.zeros((C,), ACT_DTYPE),
            "c_fc_w": nrm((C, 4 * C), 1.0 / math.sqrt(C)),
            "c_fc_b": jnp.zeros((4 * C,), ACT_DTYPE),
            "c_proj_w": nrm((4 * C, C), 1.0 / math.sqrt(4 * C)),
            "c_proj_b": jnp.zeros((C,), ACT_DTYPE),
            "ada_attn": make_adapter() if (use_adapter and cfg["adapter_pre_attn"]) else None,
            "ada_mlp": make_adapter() if (use_adapter and cfg["adapter_pre_mlp"]) else None,
        }
        params["layers"].append(lp)
    return params


# ---------------------------------- main ------------------------------------

if __name__ == "__main__":
    cfg = dict(
        input_resolution=28,      # 28 / patch 2 -> 14x14 = 196 patches (required by tubevit)
        patch_size=2,
        width=32,
        layers=2,
        heads=2,
        num_classes=10,
        adapter_width=8,
        adapter_layers=1,         # adapters only on the last layer
        adapter_kernel_size=(3, 3, 3),
        adapter_pre_attn=True,
        adapter_pre_mlp=True,
        classifier="mean",
    )
    key = jax.random.PRNGKey(0)
    pkey, xkey = jax.random.split(key)
    params = init_params(pkey, cfg)

    B, T = 2, 8                   # T must be 8 (temporal pos-embedding shape)
    fi, pi = build_tube_indices(T)
    cfg["tube_frame_idx"] = jnp.asarray(fi)
    cfg["tube_patch_idx"] = jnp.asarray(pi)

    x = jax.random.normal(
        xkey, (B, 3, T, cfg["input_resolution"], cfg["input_resolution"]), jnp.float32)

    out = expand_st_adapter_forward(x, params, cfg)
    out = jax.block_until_ready(out)
    assert out.shape == (B, cfg["num_classes"]), out.shape
    assert bool(jnp.all(jnp.isfinite(out)))
    print("KERNEL_OK")
</pallas_src>

<mosaic_0001>
module attributes {stable_mosaic.version = 11 : i64} {
  func.func @_probe_kernel(%arg0: i32, %arg1: memref<8x128xf32, #tpu.memory_space<vmem>>, %arg2: memref<8x128xf32, #tpu.memory_space<vmem>>) attributes {dimension_semantics = [#tpu.dimension_semantics<arbitrary>], iteration_bounds = array<i64: 2>, scalar_prefetch = 0 : i64, scratch_operands = 0 : i64, tpu.core_type = #tpu.core_type<tc>, window_params = [{pipeline_mode = #tpu.pipeline_mode<synchronous>, transform_indices = @transform_0, window_bounds = array<i64: 8, 128>}, {transform_indices = @transform_1, window_bounds = array<i64: 8, 128>}]} {
    %c0 = arith.constant 0 : index
    %c0_0 = arith.constant 0 : index
    %0 = vector.load %arg1[%c0, %c0_0] : memref<8x128xf32, #tpu.memory_space<vmem>>, vector<8x128xf32>
    %cst = arith.constant 1.000000e+00 : f32
    %1 = vector.broadcast %cst : f32 to vector<8x128xf32>
    %2 = arith.addf %0, %1 : vector<8x128xf32>
    %c0_1 = arith.constant 0 : index
    %c0_2 = arith.constant 0 : index
    %3 = vector.load %arg2[%c0_1, %c0_2] : memref<8x128xf32, #tpu.memory_space<vmem>>, vector<8x128xf32>
    tpu.vector_store %arg2[%c0_1, %c0_2], %2 {strides = array<i32>} : memref<8x128xf32, #tpu.memory_space<vmem>>, vector<8x128xf32>,
    return
  }
  func.func @transform_0(%arg0: i32) -> (i32, i32) {
    %c0_i32 = arith.constant 0 : i32
    %c0_i32_0 = arith.constant 0 : i32
    %c0_i32_1 = arith.constant 0 : i32
    return %c0_i32, %c0_i32_0 : i32, i32
  }
  func.func @transform_1(%arg0: i32) -> (i32, i32) {
    %c0_i32 = arith.constant 0 : i32
    %c0_i32_0 = arith.constant 0 : i32
    return %arg0, %c0_i32 : i32, i32
  }
}

module attributes {stable_mosaic.version = 11 : i64} {
  func.func @_dense_kernel(%arg0: i32, %arg1: memref<512x12xbf16, #tpu.memory_space<vmem>>, %arg2: memref<12x32xbf16, #tpu.memory_space<vmem>>, %arg3: memref<512x32xbf16, #tpu.memory_space<vmem>>) attributes {dimension_semantics = [#tpu.dimension_semantics<parallel>], iteration_bounds = array<i64: 7>, scalar_prefetch = 0 : i64, scratch_operands = 0 : i64, tpu.core_type = #tpu.core_type<tc>, window_params = [{transform_indices = @transform_0, window_bounds = array<i64: 512, 12>}, {pipeline_mode = #tpu.pipeline_mode<synchronous>, transform_indices = @transform_1, window_bounds = array<i64: 12, 32>}, {transform_indices = @transform_2, window_bounds = array<i64: 512, 32>}]} {
    %c0 = arith.constant 0 : index
    %c0_0 = arith.constant 0 : index
    %0 = vector.load %arg1[%c0, %c0_0] : memref<512x12xbf16, #tpu.memory_space<vmem>>, vector<512x12xbf16>
    %1 = arith.extf %0 : vector<512x12xbf16> to vector<512x12xf32>
    %c0_1 = arith.constant 0 : index
    %c0_2 = arith.constant 0 : index
    %2 = vector.load %arg2[%c0_1, %c0_2] : memref<12x32xbf16, #tpu.memory_space<vmem>>, vector<12x32xbf16>
    %3 = arith.truncf %1 : vector<512x12xf32> to vector<512x12xbf16>
    %cst = arith.constant dense<0.000000e+00> : vector<512x32xf32>
    %4 = tpu.matmul %3, %2, %cst {dimension_numbers = #tpu.dot_dimension_numbers<[1], [0], [0], [1], [0, 0, 1, 1], [], []>} : vector<512x12xbf16>, vector<12x32xbf16>, vector<512x32xf32> -> vector<512x32xf32>
    %5 = arith.truncf %4 : vector<512x32xf32> to vector<512x32xbf16>
    %c0_3 = arith.constant 0 : index
    %c0_4 = arith.constant 0 : index
    %6 = vector.load %arg3[%c0_3, %c0_4] : memref<512x32xbf16, #tpu.memory_space<vmem>>, vector<512x32xbf16>
    tpu.vector_store %arg3[%c0_3, %c0_4], %5 {strides = array<i32>} : memref<512x32xbf16, #tpu.memory_space<vmem>>, vector<512x32xbf16>,
    return
  }
  func.func @transform_0(%arg0: i32) -> (i32, i32) {
    %c0_i32 = arith.constant 0 : i32
    %c0_i32_0 = arith.constant 0 : i32
    return %arg0, %c0_i32 : i32, i32
  }
  func.func @transform_1(%arg0: i32) -> (i32, i32) {
    %c0_i32 = arith.constant 0 : i32
    %c0_i32_0 = arith.constant 0 : i32
    %c0_i32_1 = arith.constant 0 : i32
    return %c0_i32, %c0_i32_0 : i32, i32
  }
  func.func @transform_2(%arg0: i32) -> (i32, i32) {
    %c0_i32 = arith.constant 0 : i32
    %c0_i32_0 = arith.constant 0 : i32
    return %arg0, %c0_i32 : i32, i32
  }
}

</mosaic_0001>

<bundles_post_ra>
// kernel: tpu_custom_call.1
= control target key start
LH: loop header
LB: loop body
LE: loop exit
PB: predicated region body
PF: predicated region fallthrough
CT: control target
= control target key end

     0   :  { %6 = vsyncpa [#allocation3], 0  ;;  %s482_s0 = inlined_call_operand.hbm [shape: f32[8,128], index: 0, kind: input, shape index: {}]   ;;  %s483_s1 = inlined_call_operand.hbm [shape: f32[16,128], index: 1, kind: output, shape index: {}]  }
   0x1   :  { %7 = vsyncpa [#allocation4], 0 }
   0x2   :  { %9 = vsyncpa [#allocation4 + $0x1], 0  ;;  %s352_s6 = smov 0   ;;  %s354_s7 = smov 0  }
   0x3   :  { %s356_s8 = smov 0   ;;  %s358_s9 = smov 0  }
   0x4 LB: > { %s373_s10 = sadd.s32 4294967295, %s338_s9   ;;  %s184_s11 = sadd.s32 4294967294, %s338_s9   ;;  %s338_s9 = sphi %s358_s9, %s499_s9   ;;  %s334_s8 = sphi %s356_s8, %s498_s8   ;;  %s330_s7 = sphi %s354_s7, %s497_s7   ;;  %s326_s6 = sphi %s352_s6, %s496_s6  }
   0x5   : > { %s377_s12 = sadd.s32 1, %s338_s9   ;;  %s43_s13 = sadd.s32 1, %s334_s8 }
   0x6   : > { %s40_s14 = ssub.s32 %s338_s9, %s377_s12  ;;  %p53_p0 = scmp.ne.s32.totalorder %s334_s8, %s330_s7 }
   0x7   : > { %p41_p1 = scmp.eq.s32.totalorder %s40_s14, 0  ;;  %p54_p2 = scmp.eq.s32.totalorder %s373_s10, 1 }
   0x8   : > { %p59_p3 = scmp.ne.s32.totalorder %s330_s7, %s326_s6  ;;  %p60_p4 = scmp.eq.s32.totalorder %s184_s11, 1 }
   0x9   : > { %s388_s15 = scalar_select %p41_p1, %s334_s8, %s43_s13  }
   0xa   : > { %p390_p5 = por %p54_p2, %p53_p0  ;;  %p394_p6 = por %p60_p4, %p59_p3 }
   0xb   : > { %p185_p7 = scmp.ge.s32.totalorder %s338_s9, 1  ;;  %p67_p8 = scmp.lt.s32.totalorder %s338_s9, 3 }
   0xc   : > { %s487_s16 = scalar_select %p390_p5, 1, 0 }
   0xd   : > { %s488_s17 = scalar_select %p394_p6, 1, 0 }
   0xe   : > { %p484_p9 = scmp.eq.s32.totalorder %s373_s10, 0  ;;  %p401_p10 = pnand %p185_p7, %p67_p8 }
   0xf   : > { %s340_s19 = smov [#allocation2]   ;;  %s244_s24 = scalar_lea.hbm %s482_s0, 128 }
  0x10   : > { %s489_s18 = scalar_select %p401_p10, 1, 0 }
  0x11   : > { %s80_s20 = sshll.u32 %s340_s19, 4  ;;  %p200_p11 = pneg %p401_p10  ;;  %s81_s20 = int_to_ptr.vmem [resolvable:$true] %s80_s20 }
  0x12   : > { %p245_p13 = scmp.ne.s32.totalorder %s482_s0, %s244_s24  ;;  %p251_p3 = scmp.lt.u32.totalorder %s244_s24, %s482_s0 }
  0x13   : > { %p409_p12 = pnand %p484_p9, %p200_p11 }
  0x15   : > { %p246_p0 = pneg %p409_p12 }
  0x17   : > { %p247_p1 = pnand %p246_p0, %p245_p13 }
  0x19   : > { %p248_p2 = pneg %p247_p1 }
  0x1b   : > { %p253_p4 = pnand %p251_p3, %p248_p2 }
  0x1d   : > { %256 = shalt.err (!%p253_p4)
}
  0x1e   : > { %s257_s29 = scalar_lea.vmem %s81_s20, 128  ;;  %p265_p9 = scmp.lt.s32.totalorder %s81_s20, %s81_s20 }
  0x1f   : > { %p258_p7 = scmp.ne.s32.totalorder %s81_s20, %s257_s29  ;;  %p266_p6 = scmp.lt.s32.totalorder %s257_s29, %s257_s29 }
  0x21   : > { %p260_p8 = pnand %p258_p7, %p246_p0  ;;  %p267_p5 = por %p266_p6, %p265_p9 }
  0x23   : > { %p261_p11 = pneg %p260_p8 }
  0x25   : > { %p268_p10 = pnand %p267_p5, %p261_p11 }
  0x27   : > { %271 = shalt.err (!%p268_p10)
}
  0x28   : > { %203 = dma.hbm_to_vmem [thread:$0]  (!%p409_p12), %s482_s0, 128, %s81_s20, [#allocation3]  }
  0x29   : > { %p491_p13 = scmp.ne.s32.totalorder %s489_s18, 0 }
  0x2a   : > { %p492_p1 = scmp.eq.s32.totalorder (!%p491_p13), %s373_s10, 0 }
  0x2b   : > { %93 = sbr.rel (%p491_p13) target bundleno = 77 (0x4d), region = 24 }
  0x32   : > { %317 = dma.done.wait (%p492_p1), [#allocation3], 128   ;;  %p493_p0 = pmov %p492_p1 }
  0x33   : > { %s105_s3 = sand.u32 1, %s330_s7   ;;  %s191_s13 = sshll.u32 %s373_s10, 7  ;;  %v108_v0 = vld [vmem:[#allocation2] sm:$0xff] }
  0x34   : > { %319 = vsyncadd (%p493_p0), [#allocation3], 4294967168  ;;  %s189_s4 = sshll.u32 %s105_s3, 3  ;;  %v109_v1 = vadd.f32 1.0, %v108_v0  ;;  %s442_s19 = scalar_lea.hbm %s483_s1, %s191_s13 }
  0x35   : > { %s107_s5 = scalar_lea.vmem [#allocation5], %s189_s4  ;;  %s112_s20 = scalar_lea.sflag [#allocation4], %s105_s3 }
  0x36   : > { %s125_s11 = sshll.u32 %s107_s5, 4  ;;  %110 = vst [vmem:[%s107_s5] sm:$0xff] %v109_v1  ;;  %p494_p6 = scmp.ne.s32.totalorder %s487_s16, 0  ;;  %s437_s11 = int_to_ptr.vmem [resolvable:$true] %s125_s11 }
  0x37   : > { %s272_s21 = scalar_lea.vmem %s437_s11, 128  ;;  %s341_s10 = smov [#allocation5]  }
  0x38   : > { %p273_p5 = scmp.ne.s32.totalorder %s437_s11, %s272_s21  ;;  %s276_s22 = sshll.u32 %s341_s10, 4  ;;  %s277_s22 = int_to_ptr.vmem [resolvable:$false] %s276_s22 }
  0x39   : > { %s278_s23 = scalar_lea.vmem %s277_s22, 256  ;;  %p279_p12 = scmp.lt.s32.totalorder %s437_s11, %s277_s22 }
  0x3a   : > { %p274_p9 = pnand %p273_p5, %p494_p6  ;;  %p280_p2 = scmp.lt.s32.totalorder %s278_s23, %s272_s21 }
  0x3c   : > { %p275_p10 = pneg %p274_p9  ;;  %p281_p3 = por %p280_p2, %p279_p12 }
  0x3e   : > { %p282_p4 = pnand %p281_p3, %p275_p10 }
  0x40   : > { %285 = shalt.err (!%p282_p4)
}
  0x41   : > { %s286_s24 = scalar_lea.hbm %s442_s19, 128  ;;  %s290_s27 = scalar_lea.hbm %s483_s1, 256 }
  0x42   : > { %p287_p7 = scmp.ne.s32.totalorder %s442_s19, %s286_s24  ;;  %p291_p13 = scmp.lt.u32.totalorder %s442_s19, %s483_s1 }
  0x43   : > { %p292_p1 = scmp.lt.u32.totalorder %s290_s27, %s286_s24  ;;  %p294_p5 = scmp.lt.u32.totalorder %s286_s24, %s442_s19 }
  0x44   : > { %p288_p8 = pnand %p287_p7, %p494_p6 }
  0x45   : > { %p293_p0 = por %p292_p1, %p291_p13 }
  0x46   : > { %p289_p11 = pneg %p288_p8 }
  0x47   : > { %p295_p9 = por %p294_p5, %p293_p0 }
  0x49   : > { %p296_p10 = pnand %p295_p9, %p289_p11 }
  0x4b   : > { %299 = shalt.err (!%p296_p10)
}
  0x4c   : > { %198 = dma.vmem_to_hbm [thread:$0]  (%p494_p6), %s437_s11, 128, %s442_s19, %s112_s20  }
  0x4d PF: > { %p210_p12 = scmp.ge.s32.totalorder %s338_s9, 2  ;;  %s137_s30 = sand.u32 1, %s326_s6  }
  0x4e   : > { %p495_p2 = scmp.ne.s32.totalorder %s488_s17, 0  ;;  %s138_s2 = scalar_lea.sflag [#allocation4], %s137_s30 }
  0x50   : > { %p205_p3 = pnand %p210_p12, %p495_p2 }
  0x52   : > { %321 = dma.done.wait (!%p205_p3), %s138_s2, 128  }
  0x53   : > { %323 = vsyncadd (!%p205_p3), %s138_s2, 4294967168  ;;  %p12_p4 = scmp.ge.s32.totalorder %s377_s12, 4   ;;  %s496_s6 = smov %s330_s7 }
  0x54   : > { %s497_s7 = smov %s334_s8  ;;  %s498_s8 = smov %s388_s15 }
  0x55   : > { %s499_s9 = smov %s377_s12  ;;  %14 = sbr.rel (!%p12_p4) target bundleno = 4 (0x4), region = 61 }
  0x5c   :  { %143 = vsyncpa [#allocation3], 1 }
  0x5d   :  { %145 = vsyncpa [#allocation3 + $0x1], 1 }
  0x5e   :  { %146 = vsyncpa [#allocation4], 1 }
  0x5f   :  { %148 = vsyncpa [#allocation4 + $0x1], 1 }

// kernel: tpu_custom_call.1
= control target key start
LH: loop header
LB: loop body
LE: loop exit
PB: predicated region body
PF: predicated region fallthrough
CT: control target
= control target key end

     0   :  { %s2121_s9 = smov 0   ;;  %s2123_s10 = smov 0   ;;  %s2557_s0 = inlined_call_operand.vmem [shape: bf16[3136,12], index: 0, kind: input, shape index: {}]   ;;  %s2558_s1 = inlined_call_operand.vmem [shape: bf16[12,32], index: 1, kind: input, shape index: {}]   ;;  %s2559_s2 = inlined_call_operand.vmem [shape: bf16[3136,32], index: 2, kind: output, shape index: {}]  }
   0x1   :  { %s2125_s11 = smov 0  }
   0x2 LB: > { %s2134_s12 = sadd.s32 4294967295, %s2072_s11   ;;  %s2136_s13 = sadd.s32 1, %s2072_s11   ;;  %s2072_s11 = sphi %s2125_s11, %s2566_s11   ;;  %s2068_s10 = sphi %s2123_s10, %s2565_s10   ;;  %s2064_s9 = sphi %s2121_s9, %s2564_s9  }
   0x3   : > { %s63_s14 = ssub.s32 %s2072_s11, %s2136_s13  ;;  %s66_s15 = sadd.s32 1, %s2068_s10 }
   0x4   : > { %p64_p0 = scmp.eq.s32.totalorder %s63_s14, 0  ;;  %p76_p1 = scmp.ne.s32.totalorder %s2068_s10, %s2064_s9 }
   0x5   : > { %p77_p2 = scmp.eq.s32.totalorder %s2134_s12, 6  ;;  %p1577_p3 = scmp.ge.s32.totalorder %s2072_s11, 1 }
   0x6   : > { %s2144_s16 = scalar_select %p64_p0, %s2068_s10, %s66_s15  }
   0x7   : > { %p2146_p4 = por %p77_p2, %p76_p1  ;;  %p121_p5 = scmp.lt.s32.totalorder %s2072_s11, 8 }
   0x9   : > { %p122_p6 = pnand %p1577_p3, %p121_p5 }
   0xa   : > { %v1985_v0 = vld [vmem:[%s2558_s1] sm:$0x3f] (!%p122_p6)   ;;  %vm494_vm0 = vcmask (!%p122_p6), 1045504   ;;  %s2154_s20 = sshll.u32 (!%p122_p6), %s2134_s12, 6  ;;  %vm397_vm1 = vcmask (!%p122_p6), 97280   ;;  %s143_s26 = sand.u32 (!%p122_p6), 1, %s2064_s9  }
   0xb   : > { %125 = sbr.rel (%p122_p6) target bundleno = 390 (0x186), region = 28  ;;  %1895 = vmatprep.subr.msk.bf16.mxu0 (!%p122_p6), %vm494_vm0, %v1985_v0  ;;  %1896 = vmatprep.subr.msk.bf16.mxu1 (!%p122_p6), %vm494_vm0, %v1985_v0  ;;  %v496_v1 = vsel (!%p122_p6), %vm494_vm0, %v1985_v0, 0  ;;  %p151_p7 = scmp.lt.s32.totalorder (!%p122_p6), %s2154_s20, 391  ;;  %vm1043_vm2 = vcmask (!%p122_p6), 257024  }
   0xc   : > { %1828 = vmatpush3.bf16.msra.mxu0 (!%p122_p6), %v496_v1  ;;  %1894 = vmatpush3.bf16.msra.mxu1 (!%p122_p6), %v496_v1  ;;  %s1578_s27 = sshll.u32 (!%p122_p6), %s143_s26, 8 }
   0xd   : > { %s2228_s28 = scalar_lea.vmem (!%p122_p6), [#allocation2], %s1578_s27  }
  0x12   : > { %s152_s21 = scalar_select %p151_p7, %s2154_s20, 391 }
  0x13   : > { %s1116_s29 = ssub.s32 (%p2146_p4), 392, %s2154_s20  ;;  %s1791_s30 = sshll.u32 (%p2146_p4), %s2134_s12, 8 }
  0x14   : > { %s1580_s22 = sshll.u32 %s152_s21, 2  ;;  %p1117_p8 = scmp.lt.s32.totalorder (%p2146_p4), %s1116_s29, 64 }
  0x15   : > { %s2161_s25 = scalar_lea.vmem %s2557_s0, %s1580_s22  ;;  %s2365_s5 = scalar_lea.vmem (%p2146_p4), %s2559_s2, %s1791_s30  }
  0x16   : > { %v1986_v2 = vld [vmem:[%s2161_s25] sm:$0xff]   ;;  %v1988_v4 = vld [vmem:[%s2161_s25 + $0x8] sm:$0xff]   ;;  %v1990_v6 = vld [vmem:[%s2161_s25 + $0x10] sm:$0xff]  }
  0x17   : > { %v1987_v3 = vld [vmem:[%s2161_s25 + $0x80] sm:$0xff]   ;;  %1829 = vmatprep.mubr.msk.bf16.mxu0 %vm397_vm1, %v1986_v2  ;;  %v1989_v5 = vld [vmem:[%s2161_s25 + $0x88] sm:$0xff]   ;;  %v1991_v7 = vld [vmem:[%s2161_s25 + $0x90] sm:$0xff]  }
  0x18   : > { %1861 = vmatprep.mubr.msk.bf16.mxu1 %vm397_vm1, %v1987_v3  ;;  %1830 = vmatmul.mubr.msk.bf16.vlgmr.msra.gmra.mrb[0].mxu0 %vm397_vm1, %v1988_v4  ;;  %v1992_v8 = vld [vmem:[%s2161_s25 + $0x18] sm:$0xff]   ;;  %v1994_v10 = vld [vmem:[%s2161_s25 + $0x20] sm:$0xff]   ;;  %v1996_v12 = vld [vmem:[%s2161_s25 + $0x28] sm:$0xff]  }
  0x19   : > { %1862 = vmatmul.mubr.msk.bf16.vlgmr.msra.gmra.mrb[0].mxu1 %vm397_vm1, %v1989_v5  ;;  %1833 = vmatprep.mubr.msk.bf16.mxu0 %vm397_vm1, %v1990_v6  ;;  %v1993_v9 = vld [vmem:[%s2161_s25 + $0x98] sm:$0xff]   ;;  %v1995_v11 = vld [vmem:[%s2161_s25 + $0xa0] sm:$0xff]   ;;  %v1997_v13 = vld [vmem:[%s2161_s25 + $0xa8] sm:$0xff]  }
  0x1a   : > { %1865 = vmatprep.mubr.msk.bf16.mxu1 %vm397_vm1, %v1991_v7  ;;  %v1998_v14 = vld [vmem:[%s2161_s25 + $0x30] sm:$0xff]   ;;  %v2000_v16 = vld [vmem:[%s2161_s25 + $0x38] sm:$0xff]   ;;  %v2002_v18 = vld [vmem:[%s2161_s25 + $0x40] sm:$0xff]  }
  0x1b   : > { %v1999_v15 = vld [vmem:[%s2161_s25 + $0xb0] sm:$0xff]   ;;  %v2001_v17 = vld [vmem:[%s2161_s25 + $0xb8] sm:$0xff]   ;;  %v2003_v19 = vld [vmem:[%s2161_s25 + $0xc0] sm:$0xff]  }
  0x1c   : > { %v2004_v20 = vld [vmem:[%s2161_s25 + $0x48] sm:$0xff]   ;;  %v2006_v22 = vld [vmem:[%s2161_s25 + $0x50] sm:$0xff]   ;;  %v2008_v24 = vld [vmem:[%s2161_s25 + $0x58] sm:$0xff]  }
  0x1d   : > { %v2005_v21 = vld [vmem:[%s2161_s25 + $0xc8] sm:$0xff]   ;;  %v2007_v23 = vld [vmem:[%s2161_s25 + $0xd0] sm:$0xff]   ;;  %v2009_v25 = vld [vmem:[%s2161_s25 + $0xd8] sm:$0xff]  }
  0x1e   : > { %v2010_v26 = vld [vmem:[%s2161_s25 + $0x60] sm:$0xff]   ;;  %v2012_v28 = vld [vmem:[%s2161_s25 + $0x68] sm:$0xff]   ;;  %v2014_v30 = vld [vmem:[%s2161_s25 + $0x70] sm:$0xff]  }
  0x1f   : > { %v2011_v27 = vld [vmem:[%s2161_s25 + $0xe0] sm:$0xff]   ;;  %v2013_v29 = vld [vmem:[%s2161_s25 + $0xe8] sm:$0xff]   ;;  %v2015_v31 = vld [vmem:[%s2161_s25 + $0xf0] sm:$0xff]  }
  0x20   : > { %1834 = vmatmul.mubr.msk.bf16.gmra.mrb[4].mxu0 %vm397_vm1, %v1992_v8  ;;  %v2016_v32 = vld [vmem:[%s2161_s25 + $0x78] sm:$0xff]  }
  0x21   : > { %1866 = vmatmul.mubr.msk.bf16.gmra.mrb[4].mxu1 %vm397_vm1, %v1993_v9  ;;  %1837 = vmatprep.mubr.msk.bf16.mxu0 %vm397_vm1, %v1994_v10  ;;  %v2017_v33 = vld [vmem:[%s2161_s25 + $0xf8] sm:$0xff]  }
  0x22   : > { %1869 = vmatprep.mubr.msk.bf16.mxu1 %vm397_vm1, %v1995_v11 }
  0x28   : > { %1838 = vmatmul.mubr.msk.bf16.gmra.mrb[8].mxu0 %vm397_vm1, %v1996_v12 }
  0x29   : > { %1870 = vmatmul.mubr.msk.bf16.gmra.mrb[8].mxu1 %vm397_vm1, %v1997_v13  ;;  %1841 = vmatprep.mubr.msk.bf16.mxu0 %vm397_vm1, %v1998_v14 }
  0x2a   : > { %1873 = vmatprep.mubr.msk.bf16.mxu1 %vm397_vm1, %v1999_v15 }
  0x30   : > { %1842 = vmatmul.mubr.msk.bf16.gmra.mrb[12].mxu0 %vm397_vm1, %v2000_v16 }
  0x31   : > { %1874 = vmatmul.mubr.msk.bf16.gmra.mrb[12].mxu1 %vm397_vm1, %v2001_v17  ;;  %1845 = vmatprep.mubr.msk.bf16.mxu0 %vm397_vm1, %v2002_v18 }
  0x32   : > { %1877 = vmatprep.mubr.msk.bf16.mxu1 %vm397_vm1, %v2003_v19 }
  0x38   : > { %1846 = vmatmul.mubr.msk.bf16.gmra.mrb[16].mxu0 %vm397_vm1, %v2004_v20 }
  0x39   : > { %1878 = vmatmul.mubr.msk.bf16.gmra.mrb[16].mxu1 %vm397_vm1, %v2005_v21  ;;  %1849 = vmatprep.mubr.msk.bf16.mxu0 %vm397_vm1, %v2006_v22 }
  0x3a   : > { %1881 = vmatprep.mubr.msk.bf16.mxu1 %vm397_vm1, %v2007_v23 }
  0x40   : > { %1850 = vmatmul.mubr.msk.bf16.gmra.mrb[20].mxu0 %vm397_vm1, %v2008_v24 }
  0x41   : > { %1882 = vmatmul.mubr.msk.bf16.gmra.mrb[20].mxu1 %vm397_vm1, %v2009_v25  ;;  %1853 = vmatprep.mubr.msk.bf16.mxu0 %vm397_vm1, %v2010_v26 }
  0x42   : > { %1885 = vmatprep.mubr.msk.bf16.mxu1 %vm397_vm1, %v2011_v27 }
  0x48   : > { %1854 = vmatmul.mubr.msk.bf16.gmra.mrb[24].mxu0 %vm397_vm1, %v2012_v28 }
  0x49   : > { %1886 = vmatmul.mubr.msk.bf16.gmra.mrb[24].mxu1 %vm397_vm1, %v2013_v29  ;;  %1857 = vmatprep.mubr.msk.bf16.mxu0 %vm397_vm1, %v2014_v30 }
  0x4a   : > { %1889 = vmatprep.mubr.msk.bf16.mxu1 %vm397_vm1, %v2015_v31 }
  0x50   : > { %1858 = vmatmul.mubr.msk.bf16.gmra.mrb[28].mxu0 %vm397_vm1, %v2016_v32 }
  0x51   : > { %1890 = vmatmul.mubr.msk.bf16.gmra.mrb[28].mxu1 %vm397_vm1, %v2017_v33 }
  0xeb   : > { %v1831_v34 = vpop.f32.mrb[0].mxu0 }
  0xec   : > { %v1729_v35 = vpack.c.bf16 %v1831_v34, %v1831_v34  ;;  %v1863_v36 = vpop.f32.mrb[0].mxu1  ;;  %v532_v37 = vpop.f32.mrb[1].mxu0 }
  0xed   : > { %v1761_v38 = vpack.c.bf16 %v1863_v36, %v1863_v36  ;;  %v1727_v39 = vpack.c.bf16 %v532_v37, %v532_v37  ;;  %v660_v40 = vpop.f32.mrb[1].mxu1  ;;  %v1832_v41 = vpop.f32.mrb[2].mxu0 }
  0xee   : > { %1046 = vst.msk [vmem:[%s2228_s28 + $0x8] sm:$0xf] %vm1043_vm2, %v1729_v35  ;;  %v1759_v42 = vpack.c.bf16 %v660_v40, %v660_v40  ;;  %v1730_v43 = vpack.c.bf16 %v1832_v41, %v1832_v41  ;;  %v1864_v44 = vpop.f32.mrb[2].mxu1  ;;  %v535_v45 = vpop.f32.mrb[3].mxu0 }
  0xef   : > { %1078 = vst.msk [vmem:[%s2228_s28 + $0x88] sm:$0xf] %vm1043_vm2, %v1761_v38  ;;  %1044 = vst.msk [vmem:[%s2228_s28] sm:$0xf] %vm1043_vm2, %v1727_v39  ;;  %v1762_v46 = vpack.c.bf16 %v1864_v44, %v1864_v44  ;;  %v1728_v47 = vpack.c.bf16 %v535_v45, %v535_v45  ;;  %v663_v48 = vpop.f32.mrb[3].mxu1 }
  0xf0   : > { %1076 = vst.msk [vmem:[%s2228_s28 + $0x80] sm:$0xf] %vm1043_vm2, %v1759_v42  ;;  %1047 = vst.msk [vmem:[%s2228_s28 + $0xc] sm:$0xf] %vm1043_vm2, %v1730_v43  ;;  %v1760_v49 = vpack.c.bf16 %v663_v48, %v663_v48 }
  0xf1   : > { %1079 = vst.msk [vmem:[%s2228_s28 + $0x8c] sm:$0xf] %vm1043_vm2, %v1762_v46  ;;  %1045 = vst.msk [vmem:[%s2228_s28 + $0x4] sm:$0xf] %vm1043_vm2, %v1728_v47 }
  0xf2   : > { %1077 = vst.msk [vmem:[%s2228_s28 + $0x84] sm:$0xf] %vm1043_vm2, %v1760_v49 }
  0xf3   : > { %v1835_v50 = vpop.f32.mrb[4].mxu0 }
  0xf4   : > { %v1733_v51 = vpack.c.bf16 %v1835_v50, %v1835_v50  ;;  %v1867_v52 = vpop.f32.mrb[4].mxu1  ;;  %v548_v53 = vpop.f32.mrb[5].mxu0 }
  0xf5   : > { %v1765_v54 = vpack.c.bf16 %v1867_v52, %v1867_v52  ;;  %v1731_v55 = vpack.c.bf16 %v548_v53, %v548_v53  ;;  %v676_v56 = vpop.f32.mrb[5].mxu1  ;;  %v1836_v57 = vpop.f32.mrb[6].mxu0 }
  0xf6   : > { %1050 = vst.msk [vmem:[%s2228_s28 + $0x18] sm:$0xf] %vm1043_vm2, %v1733_v51  ;;  %v1763_v58 = vpack.c.bf16 %v676_v56, %v676_v56  ;;  %v1734_v59 = vpack.c.bf16 %v1836_v57, %v1836_v57  ;;  %v1868_v60 = vpop.f32.mrb[6].mxu1  ;;  %v551_v61 = vpop.f32.mrb[7].mxu0 }
  0xf7   : > { %1082 = vst.msk [vmem:[%s2228_s28 + $0x98] sm:$0xf] %vm1043_vm2, %v1765_v54  ;;  %1048 = vst.msk [vmem:[%s2228_s28 + $0x10] sm:$0xf] %vm1043_vm2, %v1731_v55  ;;  %v1766_v62 = vpack.c.bf16 %v1868_v60, %v1868_v60  ;;  %v1732_v63 = vpack.c.bf16 %v551_v61, %v551_v61  ;;  %v679_v0 = vpop.f32.mrb[7].mxu1 }
  0xf8   : > { %1080 = vst.msk [vmem:[%s2228_s28 + $0x90] sm:$0xf] %vm1043_vm2, %v1763_v58  ;;  %1051 = vst.msk [vmem:[%s2228_s28 + $0x1c] sm:$0xf] %vm1043_vm2, %v1734_v59  ;;  %v1764_v1 = vpack.c.bf16 %v679_v0, %v679_v0 }
  0xf9   : > { %1083 = vst.msk [vmem:[%s2228_s28 + $0x9c] sm:$0xf] %vm1043_vm2, %v1766_v62  ;;  %1049 = vst.msk [vmem:[%s2228_s28 + $0x14] sm:$0xf] %vm1043_vm2, %v1732_v63 }
  0xfa   : > { %1081 = vst.msk [vmem:[%s2228_s28 + $0x94] sm:$0xf] %vm1043_vm2, %v1764_v1 }
  0xfb   : > { %v1839_v2 = vpop.f32.mrb[8].mxu0 }
  0xfc   : > { %v1737_v3 = vpack.c.bf16 %v1839_v2, %v1839_v2  ;;  %v1871_v4 = vpop.f32.mrb[8].mxu1  ;;  %v564_v5 = vpop.f32.mrb[9].mxu0 }
  0xfd   : > { %v1769_v6 = vpack.c.bf16 %v1871_v4, %v1871_v4  ;;  %v1735_v7 = vpack.c.bf16 %v564_v5, %v564_v5  ;;  %v692_v8 = vpop.f32.mrb[9].mxu1  ;;  %v1840_v9 = vpop.f32.mrb[10].mxu0 }
  0xfe   : > { %1054 = vst.msk [vmem:[%s2228_s28 + $0x28] sm:$0xf] %vm1043_vm2, %v1737_v3  ;;  %v1767_v10 = vpack.c.bf16 %v692_v8, %v692_v8  ;;  %v1738_v11 = vpack.c.bf16 %v1840_v9, %v1840_v9  ;;  %v1872_v12 = vpop.f32.mrb[10].mxu1  ;;  %v567_v13 = vpop.f32.mrb[11].mxu0 }
  0xff   : > { %1086 = vst.msk [vmem:[%s2228_s28 + $0xa8] sm:$0xf] %vm1043_vm2, %v1769_v6  ;;  %1052 = vst.msk [vmem:[%s2228_s28 + $0x20] sm:$0xf] %vm1043_vm2, %v1735_v7  ;;  %v1770_v14 = vpack.c.bf16 %v1872_v12, %v1872_v12  ;;  %v1736_v15 = vpack.c.bf16 %v567_v13, %v567_v13  ;;  %v695_v16 = vpop.f32.mrb[11].mxu1 }
 0x100   : > { %1084 = vst.msk [vmem:[%s2228_s28 + $0xa0] sm:$0xf] %vm1043_vm2, %v1767_v10  ;;  %1055 = vst.msk [vmem:[%s2228_s28 + $0x2c] sm:$0xf] %vm1043_vm2, %v1738_v11  ;;  %v1768_v17 = vpack.c.bf16 %v695_v16, %v695_v16 }
 0x101   : > { %1087 = vst.msk [vmem:[%s2228_s28 + $0xac] sm:$0xf] %vm1043_vm2, %v1770_v14  ;;  %1053 = vst.msk [vmem:[%s2228_s28 + $0x24] sm:$0xf] %vm1043_vm2, %v1736_v15 }
 0x102   : > { %1085 = vst.msk [vmem:[%s2228_s28 + $0xa4] sm:$0xf] %vm1043_vm2, %v1768_v17 }
 0x103   : > { %v1843_v18 = vpop.f32.mrb[12].mxu0 }
 0x104   : > { %v1741_v19 = vpack.c.bf16 %v1843_v18, %v1843_v18  ;;  %v1875_v20 = vpop.f32.mrb[12].mxu1  ;;  %v580_v21 = vpop.f32.mrb[13].mxu0 }
 0x105   : > { %v1773_v22 = vpack.c.bf16 %v1875_v20, %v1875_v20  ;;  %v1739_v23 = vpack.c.bf16 %v580_v21, %v580_v21  ;;  %v708_v24 = vpop.f32.mrb[13].mxu1  ;;  %v1844_v25 = vpop.f32.mrb[14].mxu0 }
 0x106   : > { %1058 = vst.msk [vmem:[%s2228_s28 + $0x38] sm:$0xf] %vm1043_vm2, %v1741_v19  ;;  %v1771_v26 = vpack.c.bf16 %v708_v24, %v708_v24  ;;  %v1742_v27 = vpack.c.bf16 %v1844_v25, %v1844_v25  ;;  %v1876_v28 = vpop.f32.mrb[14].mxu1  ;;  %v583_v29 = vpop.f32.mrb[15].mxu0 }
 0x107   : > { %1090 = vst.msk [vmem:[%s2228_s28 + $0xb8] sm:$0xf] %vm1043_vm2, %v1773_v22  ;;  %1056 = vst.msk [vmem:[%s2228_s28 + $0x30] sm:$0xf] %vm1043_vm2, %v1739_v23  ;;  %v1774_v30 = vpack.c.bf16 %v1876_v28, %v1876_v28  ;;  %v1740_v31 = vpack.c.bf16 %v583_v29, %v583_v29  ;;  %v711_v32 = vpop.f32.mrb[15].mxu1 }
 0x108   : > { %1088 = vst.msk [vmem:[%s2228_s28 + $0xb0] sm:$0xf] %vm1043_vm2, %v1771_v26  ;;  %1059 = vst.msk [vmem:[%s2228_s28 + $0x3c] sm:$0xf] %vm1043_vm2, %v1742_v27  ;;  %v1772_v33 = vpack.c.bf16 %v711_v32, %v711_v32 }
 0x109   : > { %1091 = vst.msk [vmem:[%s2228_s28 + $0xbc] sm:$0xf] %vm1043_vm2, %v1774_v30  ;;  %1057 = vst.msk [vmem:[%s2228_s28 + $0x34] sm:$0xf] %vm1043_vm2, %v1740_v31 }
 0x10a   : > { %1089 = vst.msk [vmem:[%s2228_s28 + $0xb4] sm:$0xf] %vm1043_vm2, %v1772_v33 }
 0x10b   : > { %v1847_v34 = vpop.f32.mrb[16].mxu0 }
 0x10c   : > { %v1745_v35 = vpack.c.bf16 %v1847_v34, %v1847_v34  ;;  %v1879_v36 = vpop.f32.mrb[16].mxu1  ;;  %v596_v37 = vpop.f32.mrb[17].mxu0 }
 0x10d   : > { %v1777_v38 = vpack.c.bf16 %v1879_v36, %v1879_v36  ;;  %v1743_v39 = vpack.c.bf16 %v596_v37, %v596_v37  ;;  %v724_v40 = vpop.f32.mrb[17].mxu1  ;;  %v1848_v41 = vpop.f32.mrb[18].mxu0 }
 0x10e   : > { %1062 = vst.msk [vmem:[%s2228_s28 + $0x48] sm:$0xf] %vm1043_vm2, %v1745_v35  ;;  %v1775_v42 = vpack.c.bf16 %v724_v40, %v724_v40  ;;  %v1746_v43 = vpack.c.bf16 %v1848_v41, %v1848_v41  ;;  %v1880_v44 = vpop.f32.mrb[18].mxu1  ;;  %v599_v45 = vpop.f32.mrb[19].mxu0 }
 0x10f   : > { %1094 = vst.msk [vmem:[%s2228_s28 + $0xc8] sm:$0xf] %vm1043_vm2, %v1777_v38  ;;  %1060 = vst.msk [vmem:[%s2228_s28 + $0x40] sm:$0xf] %vm1043_vm2, %v1743_v39  ;;  %v1778_v46 = vpack.c.bf16 %v1880_v44, %v1880_v44  ;;  %v1744_v47 = vpack.c.bf16 %v599_v45, %v599_v45  ;;  %v727_v48 = vpop.f32.mrb[19].mxu1 }
 0x110   : > { %1092 = vst.msk [vmem:[%s2228_s28 + $0xc0] sm:$0xf] %vm1043_vm2, %v1775_v42  ;;  %1063 = vst.msk [vmem:[%s2228_s28 + $0x4c] sm:$0xf] %vm1043_vm2, %v1746_v43  ;;  %v1776_v49 = vpack.c.bf16 %v727_v48, %v727_v48 }
 0x111   : > { %1095 = vst.msk [vmem:[%s2228_s28 + $0xcc] sm:$0xf] %vm1043_vm2, %v1778_v46  ;;  %1061 = vst.msk [vmem:[%s2228_s28 + $0x44] sm:$0xf] %vm1043_vm2, %v1744_v47 }
 0x112   : > { %1093 = vst.msk [vmem:[%s2228_s28 + $0xc4] sm:$0xf] %vm1043_vm2, %v1776_v49 }
 0x113   : > { %v1851_v50 = vpop.f32.mrb[20].mxu0 }
 0x114   : > { %v1749_v51 = vpack.c.bf16 %v1851_v50, %v1851_v50  ;;  %v1883_v52 = vpop.f32.mrb[20].mxu1  ;;  %v612_v53 = vpop.f32.mrb[21].mxu0 }
 0x115   : > { %v1781_v54 = vpack.c.bf16 %v1883_v52, %v1883_v52  ;;  %v1747_v55 = vpack.c.bf16 %v612_v53, %v612_v53  ;;  %v740_v56 = vpop.f32.mrb[21].mxu1  ;;  %v1852_v57 = vpop.f32.mrb[22].mxu0 }
 0x116   : > { %1066 = vst.msk [vmem:[%s2228_s28 + $0x58] sm:$0xf] %vm1043_vm2, %v1749_v51  ;;  %v1779_v58 = vpack.c.bf16 %v740_v56, %v740_v56  ;;  %v1750_v59 = vpack.c.bf16 %v1852_v57, %v1852_v57  ;;  %v1884_v60 = vpop.f32.mrb[22].mxu1  ;;  %v615_v61 = vpop.f32.mrb[23].mxu0 }
 0x117   : > { %1098 = vst.msk [vmem:[%s2228_s28 + $0xd8] sm:$0xf] %vm1043_vm2, %v1781_v54  ;;  %1064 = vst.msk [vmem:[%s2228_s28 + $0x50] sm:$0xf] %vm1043_vm2, %v1747_v55  ;;  %v1782_v62 = vpack.c.bf16 %v1884_v60, %v1884_v60  ;;  %v1748_v63 = vpack.c.bf16 %v615_v61, %v615_v61  ;;  %v743_v0 = vpop.f32.mrb[23].mxu1 }
 0x118   : > { %1096 = vst.msk [vmem:[%s2228_s28 + $0xd0] sm:$0xf] %vm1043_vm2, %v1779_v58  ;;  %1067 = vst.msk [vmem:[%s2228_s28 + $0x5c] sm:$0xf] %vm1043_vm2, %v1750_v59  ;;  %v1780_v1 = vpack.c.bf16 %v743_v0, %v743_v0 }
 0x119   : > { %1099 = vst.msk [vmem:[%s2228_s28 + $0xdc] sm:$0xf] %vm1043_vm2, %v1782_v62  ;;  %1065 = vst.msk [vmem:[%s2228_s28 + $0x54] sm:$0xf] %vm1043_vm2, %v1748_v63 }
 0x11a   : > { %1097 = vst.msk [vmem:[%s2228_s28 + $0xd4] sm:$0xf] %vm1043_vm2, %v1780_v1 }
 0x11b   : > { %v1855_v2 = vpop.f32.mrb[24].mxu0 }
 0x11c   : > { %v1753_v3 = vpack.c.bf16 %v1855_v2, %v1855_v2  ;;  %v1887_v4 = vpop.f32.mrb[24].mxu1  ;;  %v628_v5 = vpop.f32.mrb[25].mxu0 }
 0x11d   : > { %v1785_v6 = vpack.c.bf16 %v1887_v4, %v1887_v4  ;;  %v1751_v7 = vpack.c.bf16 %v628_v5, %v628_v5  ;;  %v756_v8 = vpop.f32.mrb[25].mxu1  ;;  %v1856_v9 = vpop.f32.mrb[26].mxu0 }
 0x11e   : > { %1070 = vst.msk [vmem:[%s2228_s28 + $0x68] sm:$0xf] %vm1043_vm2, %v1753_v3  ;;  %v1783_v10 = vpack.c.bf16 %v756_v8, %v756_v8  ;;  %v1754_v11 = vpack.c.bf16 %v1856_v9, %v1856_v9  ;;  %v1888_v12 = vpop.f32.mrb[26].mxu1  ;;  %v631_v13 = vpop.f32.mrb[27].mxu0 }
 0x11f   : > { %1102 = vst.msk [vmem:[%s2228_s28 + $0xe8] sm:$0xf] %vm1043_vm2, %v1785_v6  ;;  %1068 = vst.msk [vmem:[%s2228_s28 + $0x60] sm:$0xf] %vm1043_vm2, %v1751_v7  ;;  %v1786_v14 = vpack.c.bf16 %v1888_v12, %v1888_v12  ;;  %v1752_v15 = vpack.c.bf16 %v631_v13, %v631_v13  ;;  %v759_v16 = vpop.f32.mrb[27].mxu1 }
 0x120   : > { %1100 = vst.msk [vmem:[%s2228_s28 + $0xe0] sm:$0xf] %vm1043_vm2, %v1783_v10  ;;  %1071 = vst.msk [vmem:[%s2228_s28 + $0x6c] sm:$0xf] %vm1043_vm2, %v1754_v11  ;;  %v1784_v17 = vpack.c.bf16 %v759_v16, %v759_v16 }
 0x121   : > { %1103 = vst.msk [vmem:[%s2228_s28 + $0xec] sm:$0xf] %vm1043_vm2, %v1786_v14  ;;  %1069 = vst.msk [vmem:[%s2228_s28 + $0x64] sm:$0xf] %vm1043_vm2, %v1752_v15 }
 0x122   : > { %1101 = vst.msk [vmem:[%s2228_s28 + $0xe4] sm:$0xf] %vm1043_vm2, %v1784_v17 }
 0x123   : > { %v1859_v18 = vpop.f32.mrb[28].mxu0 }
 0x124   : > { %v1757_v19 = vpack.c.bf16 %v1859_v18, %v1859_v18  ;;  %v1891_v20 = vpop.f32.mrb[28].mxu1  ;;  %v644_v21 = vpop.f32.mrb[29].mxu0  ;;  %1114 = sbr.rel (!%p2146_p4) target bundleno = 390 (0x186), region = 32 }
 0x125   : > { %v1789_v22 = vpack.c.bf16 %v1891_v20, %v1891_v20  ;;  %v1755_v23 = vpack.c.bf16 %v644_v21, %v644_v21  ;;  %v772_v24 = vpop.f32.mrb[29].mxu1  ;;  %v1860_v25 = vpop.f32.mrb[30].mxu0 }
 0x126   : > { %1074 = vst.msk [vmem:[%s2228_s28 + $0x78] sm:$0xf] %vm1043_vm2, %v1757_v19  ;;  %v1787_v26 = vpack.c.bf16 %v772_v24, %v772_v24  ;;  %v1758_v27 = vpack.c.bf16 %v1860_v25, %v1860_v25  ;;  %v1892_v28 = vpop.f32.mrb[30].mxu1  ;;  %v647_v29 = vpop.f32.mrb[31].mxu0 }
 0x127   : > { %1106 = vst.msk [vmem:[%s2228_s28 + $0xf8] sm:$0xf] %vm1043_vm2, %v1789_v22  ;;  %1072 = vst.msk [vmem:[%s2228_s28 + $0x70] sm:$0xf] %vm1043_vm2, %v1755_v23  ;;  %v1790_v30 = vpack.c.bf16 %v1892_v28, %v1892_v28  ;;  %v1756_v31 = vpack.c.bf16 %v647_v29, %v647_v29  ;;  %v775_v32 = vpop.f32.mrb[31].mxu1 }
 0x128   : > { %1104 = vst.msk [vmem:[%s2228_s28 + $0xf0] sm:$0xf] %vm1043_vm2, %v1787_v26  ;;  %1075 = vst.msk [vmem:[%s2228_s28 + $0x7c] sm:$0xf] %vm1043_vm2, %v1758_v27  ;;  %v1788_v33 = vpack.c.bf16 %v775_v32, %v775_v32 }
 0x129   : > { %1107 = vst.msk [vmem:[%s2228_s28 + $0xfc] sm:$0xf] %vm1043_vm2, %v1790_v30  ;;  %1073 = vst.msk [vmem:[%s2228_s28 + $0x74] sm:$0xf] %vm1043_vm2, %v1756_v31 }
 0x12a   : > { %1105 = vst.msk [vmem:[%s2228_s28 + $0xf4] sm:$0xf] %vm1043_vm2, %v1788_v33 }
 0x12b   : > { %s2568_s29 = smov (!%p1117_p8, %s1116_s29), 64 }
 0x12c   : > { %s1712_s6 = sshll.u32 %s2568_s29, 6 }
 0x12d   : > { %p1715_p9 = scmp.eq.s32.totalorder %s1712_s6, 0 }
 0x12e   : > { %s2371_s7 = sshrl.u32 (!%p1715_p9), %s2568_s29, 6 }
 0x12f   : > { %1125 = sbr.rel (%p1715_p9) target bundleno = 390 (0x186), region = 36  ;;  %p1716_p10 = scmp.le.s32.totalorder (!%p1715_p9), %s2371_s7, 0 }
 0x136   : > { %1530 = sbr.rel (%p1716_p10) target bundleno = 369 (0x171), region = 108  ;;  %s2561_s8 = smov (!%p1716_p10), %s2365_s5 }
 0x137   : > { %s2562_s9 = smov (!%p1716_p10), %s2228_s28  ;;  %s2380_s11 = smov (!%p1716_p10), 0  }
 0x138   : > { %s2382_s12 = smov (!%p1716_p10), 0  }
 0x13d LB: >> { %v1141_v34 = vld [vmem:[%s2080_s9] sm:$0xf]  ;;  %v1143_v35 = vld [vmem:[%s2080_s9 + $0x4] sm:$0xf]  ;;  %v1145_v36 = vld [vmem:[%s2080_s9 + $0x8] sm:$0xf]  ;;  %s2088_s12 = sphi %s2382_s12, %s1135_s12   ;;  %s2084_s11 = sphi %s2380_s11, %s2563_s11   ;;  %s2080_s9 = sphi %s2562_s9, %s1274_s9   ;;  %s2076_s8 = sphi %s2561_s8, %s1275_s8  }
 0x13e   : >> { %1142 = vst [vmem:[%s2076_s8] sm:$0xf] %v1141_v34  ;;  %1144 = vst [vmem:[%s2076_s8 + $0x4] sm:$0xf] %v1143_v35  ;;  %v1147_v37 = vld [vmem:[%s2080_s9 + $0xc] sm:$0xf]  ;;  %s1269_s14 = sadd.s32 1, %s2084_s11 }
 0x13f   : >> { %1146 = vst [vmem:[%s2076_s8 + $0x8] sm:$0xf] %v1145_v36  ;;  %v1149_v38 = vld [vmem:[%s2080_s9 + $0x10] sm:$0xf]  ;;  %v1151_v39 = vld [vmem:[%s2080_s9 + $0x14] sm:$0xf]  ;;  %p1270_p11 = scmp.ge.s32.totalorder %s1269_s14, %s2371_s7 }
 0x140   : >> { %1148 = vst [vmem:[%s2076_s8 + $0xc] sm:$0xf] %v1147_v37  ;;  %1150 = vst [vmem:[%s2076_s8 + $0x10] sm:$0xf] %v1149_v38  ;;  %v1153_v40 = vld [vmem:[%s2080_s9 + $0x18] sm:$0xf] }
 0x141   : >> { %1152 = vst [vmem:[%s2076_s8 + $0x14] sm:$0xf] %v1151_v39  ;;  %v1155_v41 = vld [vmem:[%s2080_s9 + $0x1c] sm:$0xf]  ;;  %v1157_v42 = vld [vmem:[%s2080_s9 + $0x20] sm:$0xf] }
 0x142   : >> { %1154 = vst [vmem:[%s2076_s8 + $0x18] sm:$0xf] %v1153_v40  ;;  %1156 = vst [vmem:[%s2076_s8 + $0x1c] sm:$0xf] %v1155_v41  ;;  %v1159_v43 = vld [vmem:[%s2080_s9 + $0x24] sm:$0xf] }
 0x143   : >> { %1158 = vst [vmem:[%s2076_s8 + $0x20] sm:$0xf] %v1157_v42  ;;  %v1161_v44 = vld [vmem:[%s2080_s9 + $0x28] sm:$0xf]  ;;  %v1163_v45 = vld [vmem:[%s2080_s9 + $0x2c] sm:$0xf] }
 0x144   : >> { %1160 = vst [vmem:[%s2076_s8 + $0x24] sm:$0xf] %v1159_v43  ;;  %1162 = vst [vmem:[%s2076_s8 + $0x28] sm:$0xf] %v1161_v44  ;;  %v1165_v46 = vld [vmem:[%s2080_s9 + $0x30] sm:$0xf] }
 0x145   : >> { %1164 = vst [vmem:[%s2076_s8 + $0x2c] sm:$0xf] %v1163_v45  ;;  %v1167_v47 = vld [vmem:[%s2080_s9 + $0x34] sm:$0xf]  ;;  %v1169_v48 = vld [vmem:[%s2080_s9 + $0x38] sm:$0xf] }
 0x146   : >> { %1166 = vst [vmem:[%s2076_s8 + $0x30] sm:$0xf] %v1165_v46  ;;  %1168 = vst [vmem:[%s2076_s8 + $0x34] sm:$0xf] %v1167_v47  ;;  %v1171_v49 = vld [vmem:[%s2080_s9 + $0x3c] sm:$0xf] }
 0x147   : >> { %1170 = vst [vmem:[%s2076_s8 + $0x38] sm:$0xf] %v1169_v48  ;;  %v1173_v50 = vld [vmem:[%s2080_s9 + $0x40] sm:$0xf]  ;;  %v1175_v51 = vld [vmem:[%s2080_s9 + $0x44] sm:$0xf] }
 0x148   : >> { %1172 = vst [vmem:[%s2076_s8 + $0x3c] sm:$0xf] %v1171_v49  ;;  %1174 = vst [vmem:[%s2076_s8 + $0x40] sm:$0xf] %v1173_v50  ;;  %v1177_v52 = vld [vmem:[%s2080_s9 + $0x48] sm:$0xf] }
 0x149   : >> { %1176 = vst [vmem:[%s2076_s8 + $0x44] sm:$0xf] %v1175_v51  ;;  %v1179_v53 = vld [vmem:[%s2080_s9 + $0x4c] sm:$0xf]  ;;  %v1181_v54 = vld [vmem:[%s2080_s9 + $0x50] sm:$0xf] }
 0x14a   : >> { %1178 = vst [vmem:[%s2076_s8 + $0x48] sm:$0xf] %v1177_v52  ;;  %1180 = vst [vmem:[%s2076_s8 + $0x4c] sm:$0xf] %v1179_v53  ;;  %v1183_v55 = vld [vmem:[%s2080_s9 + $0x54] sm:$0xf] }
 0x14b   : >> { %1182 = vst [vmem:[%s2076_s8 + $0x50] sm:$0xf] %v1181_v54  ;;  %v1185_v56 = vld [vmem:[%s2080_s9 + $0x58] sm:$0xf]  ;;  %v1187_v57 = vld [vmem:[%s2080_s9 + $0x5c] sm:$0xf] }
 0x14c   : >> { %1184 = vst [vmem:[%s2076_s8 + $0x54] sm:$0xf] %v1183_v55  ;;  %1186 = vst [vmem:[%s2076_s8 + $0x58] sm:$0xf] %v1185_v56  ;;  %v1189_v58 = vld [vmem:[%s2080_s9 + $0x60] sm:$0xf] }
 0x14d   : >> { %1188 = vst [vmem:[%s2076_s8 + $0x5c] sm:$0xf] %v1187_v57  ;;  %v1191_v59 = vld [vmem:[%s2080_s9 + $0x64] sm:$0xf]  ;;  %v1193_v60 = vld [vmem:[%s2080_s9 + $0x68] sm:$0xf] }
 0x14e   : >> { %1190 = vst [vmem:[%s2076_s8 + $0x60] sm:$0xf] %v1189_v58  ;;  %1192 = vst [vmem:[%s2076_s8 + $0x64] sm:$0xf] %v1191_v59  ;;  %v1195_v61 = vld [vmem:[%s2080_s9 + $0x6c] sm:$0xf] }
 0x14f   : >> { %1194 = vst [vmem:[%s2076_s8 + $0x68] sm:$0xf] %v1193_v60  ;;  %v1197_v62 = vld [vmem:[%s2080_s9 + $0x70] sm:$0xf]  ;;  %v1199_v63 = vld [vmem:[%s2080_s9 + $0x74] sm:$0xf] }
 0x150   : >> { %1196 = vst [vmem:[%s2076_s8 + $0x6c] sm:$0xf] %v1195_v61  ;;  %1198 = vst [vmem:[%s2076_s8 + $0x70] sm:$0xf] %v1197_v62  ;;  %v1201_v0 = vld [vmem:[%s2080_s9 + $0x78] sm:$0xf] }
 0x151   : >> { %1200 = vst [vmem:[%s2076_s8 + $0x74] sm:$0xf] %v1199_v63  ;;  %v1203_v1 = vld [vmem:[%s2080_s9 + $0x7c] sm:$0xf]  ;;  %v1205_v2 = vld [vmem:[%s2080_s9 + $0x80] sm:$0xf] }
 0x152   : >> { %1202 = vst [vmem:[%s2076_s8 + $0x78] sm:$0xf] %v1201_v0  ;;  %1204 = vst [vmem:[%s2076_s8 + $0x7c] sm:$0xf] %v1203_v1  ;;  %v1207_v3 = vld [vmem:[%s2080_s9 + $0x84] sm:$0xf] }
 0x153   : >> { %1206 = vst [vmem:[%s2076_s8 + $0x80] sm:$0xf] %v1205_v2  ;;  %v1209_v4 = vld [vmem:[%s2080_s9 + $0x88] sm:$0xf]  ;;  %v1211_v5 = vld [vmem:[%s2080_s9 + $0x8c] sm:$0xf] }
 0x154   : >> { %1208 = vst [vmem:[%s2076_s8 + $0x84] sm:$0xf] %v1207_v3  ;;  %1210 = vst [vmem:[%s2076_s8 + $0x88] sm:$0xf] %v1209_v4  ;;  %v1213_v6 = vld [vmem:[%s2080_s9 + $0x90] sm:$0xf] }
 0x155   : >> { %1212 = vst [vmem:[%s2076_s8 + $0x8c] sm:$0xf] %v1211_v5  ;;  %v1215_v7 = vld [vmem:[%s2080_s9 + $0x94] sm:$0xf]  ;;  %v1217_v8 = vld [vmem:[%s2080_s9 + $0x98] sm:$0xf] }
 0x156   : >> { %1214 = vst [vmem:[%s2076_s8 + $0x90] sm:$0xf] %v1213_v6  ;;  %1216 = vst [vmem:[%s2076_s8 + $0x94] sm:$0xf] %v1215_v7  ;;  %v1219_v9 = vld [vmem:[%s2080_s9 + $0x9c] sm:$0xf] }
 0x157   : >> { %1218 = vst [vmem:[%s2076_s8 + $0x98] sm:$0xf] %v1217_v8  ;;  %v1221_v10 = vld [vmem:[%s2080_s9 + $0xa0] sm:$0xf]  ;;  %v1223_v11 = vld [vmem:[%s2080_s9 + $0xa4] sm:$0xf] }
 0x158   : >> { %1220 = vst [vmem:[%s2076_s8 + $0x9c] sm:$0xf] %v1219_v9  ;;  %1222 = vst [vmem:[%s2076_s8 + $0xa0] sm:$0xf] %v1221_v10  ;;  %v1225_v12 = vld [vmem:[%s2080_s9 + $0xa8] sm:$0xf] }
 0x159   : >> { %1224 = vst [vmem:[%s2076_s8 + $0xa4] sm:$0xf] %v1223_v11  ;;  %v1227_v13 = vld [vmem:[%s2080_s9 + $0xac] sm:$0xf]  ;;  %v1229_v14 = vld [vmem:[%s2080_s9 + $0xb0] sm:$0xf] }
 0x15a   : >> { %1226 = vst [vmem:[%s2076_s8 + $0xa8] sm:$0xf] %v1225_v12  ;;  %1228 = vst [vmem:[%s2076_s8 + $0xac] sm:$0xf] %v1227_v13  ;;  %v1231_v15 = vld [vmem:[%s2080_s9 + $0xb4] sm:$0xf] }
 0x15b   : >> { %1230 = vst [vmem:[%s2076_s8 + $0xb0] sm:$0xf] %v1229_v14  ;;  %v1233_v16 = vld [vmem:[%s2080_s9 + $0xb8] sm:$0xf]  ;;  %v1235_v17 = vld [vmem:[%s2080_s9 + $0xbc] sm:$0xf] }
 0x15c   : >> { %1232 = vst [vmem:[%s2076_s8 + $0xb4] sm:$0xf] %v1231_v15  ;;  %1234 = vst [vmem:[%s2076_s8 + $0xb8] sm:$0xf] %v1233_v16  ;;  %v1237_v18 = vld [vmem:[%s2080_s9 + $0xc0] sm:$0xf] }
 0x15d   : >> { %1236 = vst [vmem:[%s2076_s8 + $0xbc] sm:$0xf] %v1235_v17  ;;  %v1239_v19 = vld [vmem:[%s2080_s9 + $0xc4] sm:$0xf]  ;;  %v1241_v20 = vld [vmem:[%s2080_s9 + $0xc8] sm:$0xf] }
 0x15e   : >> { %1238 = vst [vmem:[%s2076_s8 + $0xc0] sm:$0xf] %v1237_v18  ;;  %1240 = vst [vmem:[%s2076_s8 + $0xc4] sm:$0xf] %v1239_v19  ;;  %v1243_v21 = vld [vmem:[%s2080_s9 + $0xcc] sm:$0xf] }
 0x15f   : >> { %1242 = vst [vmem:[%s2076_s8 + $0xc8] sm:$0xf] %v1241_v20  ;;  %v1245_v22 = vld [vmem:[%s2080_s9 + $0xd0] sm:$0xf]  ;;  %v1247_v23 = vld [vmem:[%s2080_s9 + $0xd4] sm:$0xf] }
 0x160   : >> { %1244 = vst [vmem:[%s2076_s8 + $0xcc] sm:$0xf] %v1243_v21  ;;  %1246 = vst [vmem:[%s2076_s8 + $0xd0] sm:$0xf] %v1245_v22  ;;  %v1249_v24 = vld [vmem:[%s2080_s9 + $0xd8] sm:$0xf] }
 0x161   : >> { %1248 = vst [vmem:[%s2076_s8 + $0xd4] sm:$0xf] %v1247_v23  ;;  %v1251_v25 = vld [vmem:[%s2080_s9 + $0xdc] sm:$0xf]  ;;  %v1253_v26 = vld [vmem:[%s2080_s9 + $0xe0] sm:$0xf] }
 0x162   : >> { %1250 = vst [vmem:[%s2076_s8 + $0xd8] sm:$0xf] %v1249_v24  ;;  %1252 = vst [vmem:[%s2076_s8 + $0xdc] sm:$0xf] %v1251_v25  ;;  %v1255_v27 = vld [vmem:[%s2080_s9 + $0xe4] sm:$0xf] }
 0x163   : >> { %1254 = vst [vmem:[%s2076_s8 + $0xe0] sm:$0xf] %v1253_v26  ;;  %v1257_v28 = vld [vmem:[%s2080_s9 + $0xe8] sm:$0xf]  ;;  %v1259_v29 = vld [vmem:[%s2080_s9 + $0xec] sm:$0xf] }
 0x164   : >> { %1256 = vst [vmem:[%s2076_s8 + $0xe4] sm:$0xf] %v1255_v27  ;;  %1258 = vst [vmem:[%s2076_s8 + $0xe8] sm:$0xf] %v1257_v28  ;;  %v1261_v30 = vld [vmem:[%s2080_s9 + $0xf0] sm:$0xf] }
 0x165   : >> { %1260 = vst [vmem:[%s2076_s8 + $0xec] sm:$0xf] %v1259_v29  ;;  %v1263_v31 = vld [vmem:[%s2080_s9 + $0xf4] sm:$0xf]  ;;  %v1265_v32 = vld [vmem:[%s2080_s9 + $0xf8] sm:$0xf] }
 0x166   : >> { %1262 = vst [vmem:[%s2076_s8 + $0xf0] sm:$0xf] %v1261_v30  ;;  %1264 = vst [vmem:[%s2076_s8 + $0xf4] sm:$0xf] %v1263_v31  ;;  %v1267_v33 = vld [vmem:[%s2080_s9 + $0xfc] sm:$0xf] }
 0x167   : >> { %1266 = vst [vmem:[%s2076_s8 + $0xf8] sm:$0xf] %v1265_v32  ;;  %1268 = vst [vmem:[%s2076_s8 + $0xfc] sm:$0xf] %v1267_v33  ;;  %s2570_s14 = smov (%p1270_p11, %s1269_s14), 0  ;;  %s1135_s12 = sadd.s32 1, %s2088_s12  }
 0x168   : >> { %s1717_s15 = sshll.u32 %s2570_s14, 8  ;;  %p1134_p12 = scmp.ge.s32.totalorder %s1135_s12, %s2371_s7 }
 0x169   : >> { %s1274_s9 = scalar_lea.vmem %s2228_s28, %s1717_s15 [#allocation2]   ;;  %s1275_s8 = scalar_lea.vmem %s2365_s5, %s1717_s15  }
 0x16a   : >> { %s2563_s11 = smov %s2570_s14  ;;  %1137 = sbr.rel (!%p1134_p12) target bundleno = 317 (0x13d), region = 114 }
 0x171 PF: > { %s2539_s17 = sand.u32 63, %s2568_s29   ;;  %s1792_s18 = sshll.u32 %s2371_s7, 8 }
 0x172   : > { %s1280_s19 = scalar_lea.vmem %s2228_s28, %s1792_s18 [#allocation2]   ;;  %s1282_s20 = scalar_lea.vmem %s2365_s5, %s1792_s18  }
 0x173   : > { %p1722_p13 = scmp.le.s32.totalorder %s2539_s17, 0 }
 0x174   : > { %s2090_s21 = smov (!%p1722_p13), %s1282_s20   ;;  %s2094_s22 = smov (!%p1722_p13), %s1280_s19  }
 0x175   : > { %1544 = sbr.rel (%p1722_p13) target bundleno = 390 (0x186), region = 119  ;;  %s2098_s23 = smov (!%p1722_p13), 0  }
 0x176   : > { %s2102_s24 = smov (!%p1722_p13), 0  }
 0x17c LB: >> { %v1292_v34 = vld [vmem:[%s2096_s22] sm:$0xf]  ;;  %s1294_s25 = sadd.s32 1, %s2100_s23  ;;  %s1286_s24 = sadd.s32 1, %s2104_s24   ;;  %s2104_s24 = sphi %s2102_s24, %s1286_s24   ;;  %s2100_s23 = sphi %s2098_s23, %s2099_s23   ;;  %s2096_s22 = sphi %s2094_s22, %s1299_s22   ;;  %s2092_s21 = sphi %s2090_s21, %s1300_s21  }
 0x17d   : >> { %1293 = vst [vmem:[%s2092_s21] sm:$0xf] %v1292_v34  ;;  %p1295_p0 = scmp.ge.s32.totalorder %s1294_s25, %s2539_s17  ;;  %p1285_p1 = scmp.ge.s32.totalorder %s1286_s24, %s2539_s17 }
 0x17f   : >> { %s2572_s25 = smov (%p1295_p0, %s1294_s25), 0  ;;  %1288 = sbr.rel (!%p1285_p1) target bundleno = 380 (0x17c), region = 125 }
 0x180   : >> { %s1723_s26 = sshll.u32 %s2572_s25, 2  ;;  %s2099_s23 = smov %s2572_s25  }
 0x181   : >> { %s1299_s22 = scalar_lea.vmem %s1280_s19, %s1723_s26 [#allocation2]   ;;  %s1300_s21 = scalar_lea.vmem %s1282_s20, %s1723_s26  }
 0x186 PF: > { %p9_p2 = scmp.ge.s32.totalorder %s2136_s13, 9   ;;  %s2564_s9 = smov %s2068_s10 }
 0x187   : > { %s2565_s10 = smov %s2144_s16  ;;  %s2566_s11 = smov %s2136_s13 }
 0x188   :  { %11 = sbr.rel (!%p9_p2) target bundleno = 2 (0x2), region = 136 }

</bundles_post_ra>
